<compile_context>
chip_gen: v7x
topology: tpu7x:2x2x1
jax: 0.10.0
libtpu: 0.0.40
codegen_flags: <defaults>
</compile_context>

<pallas_src>
import numpy as np
import jax
import jax.numpy as jnp
from jax.experimental import pallas as pl
from jax.experimental.pallas import tpu as pltpu

HIDDEN = 32
_EPS = 1e-3               # gatr extract_point threshold


def _nbody_gcan_kernel(x_ref, w1_ref, b1_ref, w2_ref, b2_ref, out_ref):
    # x_ref : (7, TM)   column j = [mass, px, py, pz, vx, vy, vz] of object j
    # w1_ref: (H, 7)    (PGA embedding folded into MLP layer 1)^T
    # b1_ref: (H, 1)
    # w2_ref: (4, H)    (MLP layer 2 folded with point / e123 extraction)^T
    # b2_ref: (4, 1)
    # out   : (4, TM)   rows 0-2 = predicted point, row 3 = (|e123| - 1)^2
    h = jnp.dot(w1_ref[...], x_ref[...], preferred_element_type=jnp.float32)
    h = jnp.maximum(h + b1_ref[...], 0.0)
    y = jnp.dot(w2_ref[...], h, preferred_element_type=jnp.float32) + b2_ref[...]

    # row 3 of y is the e123 (homogeneous) component; rows 0-2 are the point
    # numerators (-x_023, x_013, -x_012).
    d = y[3:4, :]                                                     # (1, TM)
    d_safe = jnp.where(jnp.abs(d) > _EPS, d, jnp.full_like(d, _EPS))  # gatr threshold
    inv = 1.0 / d_safe                                                # exact, (1, TM)

    points = y * inv                        # rows 0-2 -> predicted coordinates
    sq = jnp.square(jnp.abs(d) - 1.0)       # per-object regularizer term (1, TM)
    row = jax.lax.broadcasted_iota(jnp.int32, y.shape, 0)
    out_ref[...] = jnp.where(row == 3, jnp.broadcast_to(sq, y.shape), points)


def _round_up(a, b):
    return ((a + b - 1) // b) * b


def nbody_gcan_forward(inputs, w1, b1, w2, b2, *, tile_m=2048):
    """inputs: (B, N, 7) float32 -> (points (B, N, 3), reg (B,))."""
    B, N, F = inputs.shape
    assert F == 7
    M = B * N
    f32 = jnp.float32

    # --- host-side constant folding --------------------------------------
    # PGA embedding E (7 -> 16) and additive offset c (1, 16).
    E = np.zeros((7, 16), np.float32)
    E[0, 0] = 1.0       # mass -> scalar
    E[1, 13] = -1.0     # x    -> -e023 slot
    E[2, 12] = 1.0      # y    -> +e013 slot
    E[3, 11] = -1.0     # z    -> -e012 slot
    E[4, 5] = 0.5       # vx   -> e01 (translation versor bivector)
    E[5, 6] = 0.5       # vy   -> e02
    E[6, 7] = 0.5       # vz   -> e03
    c = np.zeros((1, 16), np.float32)
    c[0, 0] = 1.0       # translation versor identity (scalar 1)
    c[0, 14] = 1.0      # homogeneous point coordinate e123

    # Extraction projection (16 -> 4): columns 0-2 = point numerators, 3 = e123.
    P = np.zeros((16, 4), np.float32)
    P[13, 0] = -1.0
    P[12, 1] = 1.0
    P[11, 2] = -1.0
    P[14, 3] = 1.0

    w1 = jnp.asarray(w1, f32)
    b1 = jnp.asarray(b1, f32).reshape(1, -1)
    w2 = jnp.asarray(w2, f32)
    b2 = jnp.asarray(b2, f32).reshape(1, -1)
    H = w1.shape[1]

    # Exact folding (embedding is linear before layer 1, extraction is linear
    # after layer 2; ReLU only between the layers).  Stored transposed for the
    # feature-major kernel layout.
    w1t = (jnp.asarray(E) @ w1).T              # (H, 7)
    b1t = (jnp.asarray(c) @ w1 + b1).T         # (H, 1)
    w2t = (w2 @ jnp.asarray(P)).T              # (4, H)
    b2t = (b2 @ jnp.asarray(P)).T              # (4, 1)

    # --- tiling over the flattened (batch * objects) lane axis -------------
    tm = min(_round_up(tile_m, 128), _round_up(M, 128))   # multiple of 128
    m_pad = _round_up(M, tm)
    grid = (m_pad // tm,)

    xT = inputs.reshape(M, 7).astype(f32).T                # (7, M), lane-dense
    if m_pad != M:
        xT = jnp.pad(xT, ((0, 0), (0, m_pad - M)))         # padded cols sliced off

    out = pl.pallas_call(
        _nbody_gcan_kernel,
        out_shape=jax.ShapeDtypeStruct((4, m_pad), f32),
        grid_spec=pltpu.PrefetchScalarGridSpec(
            num_scalar_prefetch=0,
            grid=grid,
            in_specs=[
                pl.BlockSpec((7, tm), lambda i: (0, i)),       # object tile
                pl.BlockSpec((H, 7), lambda i: (0, 0)),        # resident weights
                pl.BlockSpec((H, 1), lambda i: (0, 0)),
                pl.BlockSpec((4, H), lambda i: (0, 0)),
                pl.BlockSpec((4, 1), lambda i: (0, 0)),
            ],
            out_specs=pl.BlockSpec((4, tm), lambda i: (0, i)),
        ),
        compiler_params=pltpu.CompilerParams(
            dimension_semantics=("parallel",)),               # megacore sharding
    )(xT, w1t, b1t, w2t, b2t)

    points = out[0:3, :M].T.reshape(B, N, 3)            # glue transpose / reshape
    reg = jnp.sum(out[3, :M].reshape(B, N), axis=1)     # per-batch sum over objects
    return points, reg


def _reference_forward(inputs, w1, b1, w2, b2):
    """Pure-JAX replica of the module semantics (same substitute MLP)."""
    f32 = jnp.float32
    B, N, _ = inputs.shape
    x = inputs.astype(f32)
    mv = jnp.zeros((B, N, 16), f32)
    mv = mv.at[..., 0].set(x[..., 0] + 1.0)
    mv = mv.at[..., 13].set(-x[..., 1])
    mv = mv.at[..., 12].set(x[..., 2])
    mv = mv.at[..., 11].set(-x[..., 3])
    mv = mv.at[..., 14].set(1.0)
    mv = mv.at[..., 5].set(0.5 * x[..., 4])
    mv = mv.at[..., 6].set(0.5 * x[..., 5])
    mv = mv.at[..., 7].set(0.5 * x[..., 6])
    h = jnp.maximum(mv @ w1 + b1, 0.0)
    y = h @ w2 + b2
    d = y[..., 14:15]
    d = jnp.where(jnp.abs(d) > _EPS, d, jnp.full_like(d, _EPS))
    points = jnp.stack([-y[..., 13], y[..., 12], -y[..., 11]], axis=-1) / d
    reg = jnp.sum(jnp.square(jnp.abs(y[..., 14]) - 1.0), axis=-1)
    return points, reg


if __name__ == "__main__":
    key = jax.random.PRNGKey(0)
    k_in, k_w1, k_w2 = jax.random.split(key, 3)

    B, N = 2, 8                          # batch, objects
    inputs = jax.random.normal(k_in, (B, N, 7), dtype=jnp.float32)

    # Deterministic synthetic net parameters (2-layer MLP over 16 mv components).
    w1 = 0.1 * jax.random.normal(k_w1, (16, HIDDEN), dtype=jnp.float32)
    b1 = jnp.zeros((HIDDEN,), jnp.float32)
    w2 = 0.1 * jax.random.normal(k_w2, (HIDDEN, 16), dtype=jnp.float32)
    b2 = jnp.zeros((16,), jnp.float32)

    points, reg = nbody_gcan_forward(inputs, w1, b1, w2, b2)
    jax.block_until_ready((points, reg))

    assert points.shape == (B, N, 3) and points.dtype == jnp.float32
    assert reg.shape == (B,) and reg.dtype == jnp.float32
    assert bool(jnp.all(jnp.isfinite(points))) and bool(jnp.all(jnp.isfinite(reg)))

    ref_points, ref_reg = _reference_forward(inputs, w1, b1, w2, b2)
    assert np.allclose(np.asarray(points), np.asarray(ref_points), rtol=2e-3, atol=2e-3)
    assert np.allclose(np.asarray(reg), np.asarray(ref_reg), rtol=2e-3, atol=2e-3)

    print("KERNEL_OK")
</pallas_src>

<mosaic_0001>
module attributes {stable_mosaic.version = 11 : i64} {
  func.func @_nbody_gcan_kernel(%arg0: i32, %arg1: memref<7x128xf32, #tpu.memory_space<vmem>>, %arg2: memref<32x7xf32, #tpu.memory_space<vmem>>, %arg3: memref<32x1xf32, #tpu.memory_space<vmem>>, %arg4: memref<4x32xf32, #tpu.memory_space<vmem>>, %arg5: memref<4x1xf32, #tpu.memory_space<vmem>>, %arg6: memref<4x128xf32, #tpu.memory_space<vmem>>) attributes {dimension_semantics = [#tpu.dimension_semantics<parallel>], iteration_bounds = array<i64: 1>, scalar_prefetch = 0 : i64, scratch_operands = 0 : i64, tpu.core_type = #tpu.core_type<tc>, window_params = [{transform_indices = @transform_0, window_bounds = array<i64: 7, 128>}, {pipeline_mode = #tpu.pipeline_mode<synchronous>, transform_indices = @transform_1, window_bounds = array<i64: 32, 7>}, {pipeline_mode = #tpu.pipeline_mode<synchronous>, transform_indices = @transform_2, window_bounds = array<i64: 32, 1>}, {pipeline_mode = #tpu.pipeline_mode<synchronous>, transform_indices = @transform_3, window_bounds = array<i64: 4, 32>}, {pipeline_mode = #tpu.pipeline_mode<synchronous>, transform_indices = @transform_4, window_bounds = array<i64: 4, 1>}, {transform_indices = @transform_5, window_bounds = array<i64: 4, 128>}]} {
    %c0 = arith.constant 0 : index
    %c0_0 = arith.constant 0 : index
    %0 = vector.load %arg2[%c0, %c0_0] : memref<32x7xf32, #tpu.memory_space<vmem>>, vector<32x7xf32>
    %c0_1 = arith.constant 0 : index
    %c0_2 = arith.constant 0 : index
    %1 = vector.load %arg1[%c0_1, %c0_2] : memref<7x128xf32, #tpu.memory_space<vmem>>, vector<7x128xf32>
    %cst = arith.constant dense<0.000000e+00> : vector<32x128xf32>
    %2 = tpu.matmul %0, %1, %cst {dimension_numbers = #tpu.dot_dimension_numbers<[1], [0], [0], [1], [0, 0, 1, 1], [], []>} : vector<32x7xf32>, vector<7x128xf32>, vector<32x128xf32> -> vector<32x128xf32>
    %c0_3 = arith.constant 0 : index
    %c0_4 = arith.constant 0 : index
    %3 = vector.load %arg3[%c0_3, %c0_4] : memref<32x1xf32, #tpu.memory_space<vmem>>, vector<32x1xf32>
    %4 = vector.broadcast %3 : vector<32x1xf32> to vector<32x128xf32>
    %5 = arith.addf %2, %4 : vector<32x128xf32>
    %cst_5 = arith.constant 0.000000e+00 : f32
    %6 = vector.broadcast %cst_5 : f32 to vector<32x128xf32>
    %7 = arith.maximumf %5, %6 : vector<32x128xf32>
    %c0_6 = arith.constant 0 : index
    %c0_7 = arith.constant 0 : index
    %8 = vector.load %arg4[%c0_6, %c0_7] : memref<4x32xf32, #tpu.memory_space<vmem>>, vector<4x32xf32>
    %cst_8 = arith.constant dense<0.000000e+00> : vector<4x128xf32>
    %9 = tpu.matmul %8, %7, %cst_8 {dimension_numbers = #tpu.dot_dimension_numbers<[1], [0], [0], [1], [0, 0, 1, 1], [], []>} : vector<4x32xf32>, vector<32x128xf32>, vector<4x128xf32> -> vector<4x128xf32>
    %c0_9 = arith.constant 0 : index
    %c0_10 = arith.constant 0 : index
    %10 = vector.load %arg5[%c0_9, %c0_10] : memref<4x1xf32, #tpu.memory_space<vmem>>, vector<4x1xf32>
    %11 = vector.broadcast %10 : vector<4x1xf32> to vector<4x128xf32>
    %12 = arith.addf %9, %11 : vector<4x128xf32>
    %13 = vector.extract_strided_slice %12 {offsets = [3, 0], sizes = [1, 128], strides = [1, 1]} : vector<4x128xf32> to vector<1x128xf32>
    %14 = math.absf %13 : vector<1x128xf32>
    %cst_11 = arith.constant 1.000000e-03 : f32
    %15 = vector.broadcast %cst_11 : f32 to vector<1x128xf32>
    %16 = arith.cmpf ogt, %14, %15 : vector<1x128xf32>
    %cst_12 = arith.constant 1.000000e-03 : f32
    %17 = vector.broadcast %cst_12 : f32 to vector<1x128xf32>
    %18 = arith.select %16, %13, %17 : vector<1x128xi1>, vector<1x128xf32>
    %cst_13 = arith.constant 1.000000e+00 : f32
    %19 = vector.broadcast %cst_13 : f32 to vector<1x128xf32>
    %20 = arith.divf %19, %18 : vector<1x128xf32>
    %21 = vector.broadcast %20 : vector<1x128xf32> to vector<4x128xf32>
    %22 = arith.mulf %12, %21 : vector<4x128xf32>
    %23 = math.absf %13 : vector<1x128xf32>
    %cst_14 = arith.constant 1.000000e+00 : f32
    %24 = vector.broadcast %cst_14 : f32 to vector<1x128xf32>
    %25 = arith.subf %23, %24 : vector<1x128xf32>
    %26 = arith.mulf %25, %25 : vector<1x128xf32>
    %27 = tpu.iota {dimensions = array<i32: 0>} : vector<4x128xi32>
    %c3_i32 = arith.constant 3 : i32
    %28 = vector.broadcast %c3_i32 : i32 to vector<4x128xi32>
    %29 = arith.cmpi eq, %27, %28 : vector<4x128xi32>
    %30 = vector.shape_cast %26 : vector<1x128xf32> to vector<1x128xf32>
    %31 = vector.broadcast %30 : vector<1x128xf32> to vector<4x128xf32>
    %32 = arith.select %29, %31, %22 : vector<4x128xi1>, vector<4x128xf32>
    %c0_15 = arith.constant 0 : index
    %c0_16 = arith.constant 0 : index
    %33 = vector.load %arg6[%c0_15, %c0_16] : memref<4x128xf32, #tpu.memory_space<vmem>>, vector<4x128xf32>
    tpu.vector_store %arg6[%c0_15, %c0_16], %32 {strides = array<i32>} : memref<4x128xf32, #tpu.memory_space<vmem>>, vector<4x128xf32>,
    return
  }
  func.func @transform_0(%arg0: i32) -> (i32, i32) {
    %c0_i32 = arith.constant 0 : i32
    %c0_i32_0 = arith.constant 0 : i32
    return %c0_i32, %arg0 : i32, i32
  }
  func.func @transform_1(%arg0: i32) -> (i32, i32) {
    %c0_i32 = arith.constant 0 : i32
    %c0_i32_0 = arith.constant 0 : i32
    %c0_i32_1 = arith.constant 0 : i32
    return %c0_i32, %c0_i32_0 : i32, i32
  }
  func.func @transform_2(%arg0: i32) -> (i32, i32) {
    %c0_i32 = arith.constant 0 : i32
    %c0_i32_0 = arith.constant 0 : i32
    %c0_i32_1 = arith.constant 0 : i32
    return %c0_i32, %c0_i32_0 : i32, i32
  }
  func.func @transform_3(%arg0: i32) -> (i32, i32) {
    %c0_i32 = arith.constant 0 : i32
    %c0_i32_0 = arith.constant 0 : i32
    %c0_i32_1 = arith.constant 0 : i32
    return %c0_i32, %c0_i32_0 : i32, i32
  }
  func.func @transform_4(%arg0: i32) -> (i32, i32) {
    %c0_i32 = arith.constant 0 : i32
    %c0_i32_0 = arith.constant 0 : i32
    %c0_i32_1 = arith.constant 0 : i32
    return %c0_i32, %c0_i32_0 : i32, i32
  }
  func.func @transform_5(%arg0: i32) -> (i32, i32) {
    %c0_i32 = arith.constant 0 : i32
    %c0_i32_0 = arith.constant 0 : i32
    return %c0_i32, %arg0 : i32, i32
  }
}

</mosaic_0001>

<bundles_post_ra>
// kernel: tpu_custom_call.1
= control target key start
LH: loop header
LB: loop body
LE: loop exit
PB: predicated region body
PF: predicated region fallthrough
CT: control target
= control target key end

     0   :  { %vm63_vm0 = vcmask 1046528   ;;  %vm50_vm1 = vcmask 56320   ;;  %v347_v5 = vmov 0   ;;  %s431_s0 = inlined_call_operand.vmem [shape: f32[7,128], index: 0, kind: input, shape index: {}]   ;;  %s432_s1 = inlined_call_operand.vmem [shape: f32[32,7], index: 1, kind: input, shape index: {}]   ;;  %s433_s2 = inlined_call_operand.vmem [shape: f32[32,1], index: 2, kind: input, shape index: {}]   ;;  %s434_s3 = inlined_call_operand.vmem [shape: f32[4,32], index: 3, kind: input, shape index: {}]   ;;  %s435_s4 = inlined_call_operand.vmem [shape: f32[4,1], index: 4, kind: input, shape index: {}]   ;;  %s436_s5 = inlined_call_operand.hbm [shape: f32[4,128], index: 5, kind: output, shape index: {}]  }
   0x1   :  { %v25_v0 = vld [vmem:[%s431_s0] sm:$0x7f]  ;;  %v22_v2 = vld [vmem:[%s432_s1 + $0x8] sm:$0xff]  ;;  %v23_v3 = vld [vmem:[%s432_s1 + $0x10] sm:$0xff]  ;;  %319 = vset.pattern.permute.xlu0 %v347_v5 }
   0x2   :  { %v21_v1 = vld [vmem:[%s432_s1] sm:$0xff]  ;;  %289 = vmatprep.subr.msk.mxu0 %vm63_vm0, %v25_v0  ;;  %v28_v6 = vld [vmem:[%s433_s2 + $0x10] sm:$0xff] }
   0x3   :  { %291 = vmatprep.mubr.msk.f32.mxu0 %vm50_vm1, %v21_v1  ;;  %v26_v4 = vld [vmem:[%s433_s2] sm:$0xff]  ;;  %290 = vmatpush3.msk.msra.mxu0 %vm63_vm0, %v25_v0 }
   0x4   :  { %292 = vmatmul.mubr.msk.f32.vlgmr.msra.gmra.mrb[0].mxu0 %vm50_vm1, %v22_v2  ;;  %32 = vperm.xlu0 %319, %v26_v4  }
   0x5   :  { %10 = vsyncpa [#allocation3], 0  ;;  %294 = vmatprep.mubr.msk.f32.mxu0 %vm50_vm1, %v23_v3  ;;  %v24_v7 = vld [vmem:[%s432_s1 + $0x18] sm:$0xff]  ;;  %v27_v8 = vld [vmem:[%s433_s2 + $0x8] sm:$0xff]  ;;  %320 = vset.pattern.permute.xlu1 %v347_v5  ;;  %v348_v11 = vmov 0.0|0.0   ;;  %vm349_vm2 = vmmov 0   ;;  %v242_v38 = vlaneseq }
   0x6   :  { %42 = vperm.xlu1 %320, %v28_v6   ;;  %v29_v9 = vld [vmem:[%s433_s2 + $0x18] sm:$0xff]  ;;  %v157_v10 = vld [vmem:[%s435_s4] sm:$0xf]  ;;  %308 = vmatprep.subr.bf16.mxu1 %v348_v11  ;;  %v350_v12 = vmov 0.0   ;;  %vm163_vm3 = vcmask 261120   ;;  %s351_s4 = smov [#allocation2]  }
   0x7   :  { %305 = vmatprep.mubr.msk.f32.mxu1 %vm349_vm2, %v350_v12  ;;  %v156_v31 = vld [vmem:[%s434_s3] sm:$0xf]  ;;  %v243_v39 = vshrl.u32 %v242_v38, 7  ;;  %s264_s12 = sshll.u32 %s351_s4, 4  ;;  %s265_s12 = int_to_ptr.vmem [resolvable:$true] %s264_s12 }
   0x8   :  { %295 = vmatmul.mubr.msk.f32.gmra.mrb[2].mxu0 %vm50_vm1, %v24_v7  ;;  %37 = vperm.xlu0 %319, %v27_v8   ;;  %s323_s3 = scalar_lea.vmem %s265_s12, 64  ;;  %p328_p1 = scmp.lt.s32.totalorder %s265_s12, %s265_s12 }
   0x9   :  { %v244_v41 = vsub.s32 3, %v243_v39  ;;  %vm251_vm5 = vcmp.eq.s32.totalorder %v243_v39, 3  ;;  %p324_p0 = scmp.ne.s32.totalorder %s265_s12, %s323_s3  ;;  %p329_p2 = scmp.lt.s32.totalorder %s323_s3, %s323_s3 }
   0xa   :  { %47 = vperm.xlu1 %320, %v29_v9  }
   0xb   :  { %p330_p3 = por %p329_p2, %p328_p1 }
   0xc   :  { %160 = vperm.xlu0 %319, %v157_v10  }
   0xd   :  { %p331_p4 = pnand %p330_p3, %p324_p0 }
  0x83   :  { %v33_v13 = vpop.permute.xlu0 %32 }
  0x85   :  { %v43_v14 = vpop.permute.xlu1 %42 }
  0x87   :  { %v38_v15 = vpop.permute.xlu0 %37 }
  0x89   :  { %v48_v21 = vpop.permute.xlu1 %47 }
  0x8b   :  { %v161_v32 = vpop.permute.xlu0 %160 }
  0xd7   :  { %v293_v16 = vpop.f32.mrb[0].mxu0 }
  0xd8   :  { %v139_v17 = vadd.f32 %v293_v16, %v38_v15  ;;  %v133_v18 = vpop.f32.mrb[1].mxu0 }
  0xd9   :  { %v134_v19 = vadd.f32 %v133_v18, %v33_v13 }
  0xda   :  { %v153_v20 = vmax.f32 %v139_v17, 0.0 }
  0xdb   :  { %v152_v22 = vmax.f32 %v134_v19, 0.0  ;;  %v296_v23 = vpop.f32.mrb[2].mxu0 }
  0xdc   :  { %v149_v24 = vadd.f32 %v296_v23, %v48_v21  ;;  %v143_v25 = vpop.f32.mrb[3].mxu0 }
  0xdd   :  { %v144_v26 = vadd.f32 %v143_v25, %v43_v14  ;;  %v309_v27 = vpack.c.bf16 %v153_v20, %v152_v22 }
  0xde   :  { %v155_v28 = vmax.f32 %v149_v24, 0.0 }
  0xdf   :  { %v154_v29 = vmax.f32 %v144_v26, 0.0  ;;  %310 = vmatpush3.bf16.msra.mxu1 %v309_v27 }
  0xe0   :  { %311 = vmatprep.subr.bf16.mxu1 %v348_v11 }
  0xe1   :  { %v312_v30 = vpack.c.bf16 %v155_v28, %v154_v29 }
  0xe3   :  { %313 = vmatpush3.bf16.msra.mxu1 %v312_v30 }
  0xe6   :  { %306 = vmatmul.mubr.msk.f32.vlgmr.msra.gmra.mrb[0].mxu1 %vm163_vm3, %v156_v31 }
 0x1b9   :  { %v233_v33 = vpop.f32.mrb[0].mxu1 }
 0x1ba   :  { %v234_v34 = vadd.f32 %v233_v33, %v161_v32  ;;  %v307_v35 = vpop.f32.mrb[1].mxu1 }
 0x1bc   :  { %v237_v36 = vand.u32 2147483647, %v234_v34 }
 0x1be   :  { %vm238_vm4 = vcmp.gt.f32.partialorder %v237_v36, 0.001  ;;  %v278_v40 = vadd.f32 -1.0, %v237_v36 }
 0x1bf   :  { %v239_v37 = vsel %vm238_vm4, %v234_v34, 0.001 }
 0x1c0   :  { %321 = vrcp.f32 %v239_v37  ;;  %v248_v42 = vmul.f32 %v278_v40, %v278_v40 }
 0x1c2   :  { %v255_v46 = vrot.slane %v248_v42, %v244_v41 }
 0x1ca   :  { %v322_v43 = vpop.eup %321 }
 0x1cb   :  { %v245_v44 = vrot.slane %v322_v43, %v244_v41 }
 0x1cd   :  { %v246_v45 = vmul.f32 %v245_v44, %v234_v34 }
 0x1cf   :  { %v256_v47 = vsel %vm251_vm5, %v255_v46, %v246_v45 }
 0x1d0   :  { %257 = vst [vmem:[#allocation2] sm:$0xf] %v256_v47 }
 0x1d1   :  { %334 = shalt.err (!%p331_p4)
}
 0x1d2   :  { %s335_s15 = scalar_lea.hbm %s436_s5, 64 }
 0x1d3   :  { %p336_p5 = scmp.ne.s32.totalorder %s436_s5, %s335_s15  ;;  %p339_p6 = scmp.lt.u32.totalorder %s335_s15, %s436_s5 }
 0x1d5   :  { %p341_p7 = pnand %p339_p6, %p336_p5 }
 0x1d7   :  { %344 = shalt.err (!%p341_p7)
}
 0x1d8   :  { %267 = dma.vmem_to_hbm [thread:$0]  %s265_s12, 64, %s436_s5, [#allocation3]  }
 0x1d9   :  { %345 = dma.done.wait [#allocation3], 64  }
 0x1da   :  { %346 = vsyncadd [#allocation3], 4294967232 }
 0x1db   :  { %271 = vsyncpa [#allocation3], 1 }

</bundles_post_ra>
